<compile_context>
chip_gen: v5e
topology: v5e:2x2
jax: 0.10.0
libtpu: 0.0.40
codegen_flags: <defaults>
</compile_context>

<pallas_src>
import functools

import jax
import jax.numpy as jnp
from jax.experimental import pallas as pl
from jax.experimental.pallas import tpu as pltpu

NEG_SLOPE = 0.01  # nn.LeakyReLU default negative_slope


def _leaky_relu(x):
    return jnp.where(x > 0, x, NEG_SLOPE * x)


def _round_up(x, m):
    return ((x + m - 1) // m) * m


def _device_kind():
    try:
        return jax.devices()[0].device_kind.lower()
    except Exception:  # pragma: no cover - defensive
        return ""


def _vmem_capacity_bytes():
    try:
        cap = int(pltpu.get_tpu_info().vmem_capacity_bytes)
        if cap > 0:
            return cap
    except Exception:  # pragma: no cover - defensive
        pass
    return 64 << 20  # conservative fallback: smallest per-TensorCore VMEM (v7x)


def _num_tensorcores_hint():
    # v7x has 2 TensorCores per chip; v5e/v6e have 1.
    return 2 if "v7" in _device_kind() else 1


def _bspec(shape, index_map, mode=None):
    if mode is None:
        return pl.BlockSpec(shape, index_map)
    return pl.BlockSpec(shape, index_map, pipeline_mode=mode)


# ---------------------------------------------------------------------------
# Kernels
# ---------------------------------------------------------------------------
def _resident_kernel(x_ref, wt_ref, b_ref, o_ref, *, precision):
    # x_ref : (tb, N) activation tile
    # wt_ref: (N, N)  pre-transposed weight (in_features, out_features)
    # b_ref : (1, N)  bias
    x = x_ref[...]
    y = jnp.dot(x, wt_ref[...], preferred_element_type=jnp.float32,
                precision=precision)                 # x @ W.T, no re-layout
    y = y + b_ref[...].astype(jnp.float32)
    y = _leaky_relu(y)                               # relu(linear(X))
    y = y + x.astype(jnp.float32)                    # + identity (f32 VPU path)
    o_ref[...] = _leaky_relu(y).astype(o_ref.dtype)


def _tiled_kernel(xk_ref, wt_ref, b_ref, xr_ref, o_ref, acc_ref, *, precision):
    # Grid: (batch tile i, out-feature tile j, K tile k) -- k innermost.
    k = pl.program_id(2)

    @pl.when(k == 0)
    def _():
        acc_ref[...] = jnp.zeros_like(acc_ref)

    acc_ref[...] += jnp.dot(xk_ref[...], wt_ref[...],
                            preferred_element_type=jnp.float32,
                            precision=precision)

    @pl.when(k == pl.num_programs(2) - 1)
    def _():
        y = acc_ref[...] + b_ref[...].astype(jnp.float32)
        y = _leaky_relu(y)
        y = y + xr_ref[...].astype(jnp.float32)
        o_ref[...] = _leaky_relu(y).astype(o_ref.dtype)


# ---------------------------------------------------------------------------
# Path A: weight resident in VMEM, single grid axis over the batch.
# ---------------------------------------------------------------------------
def _run_resident(x, wt, b2, tb, precision, use_pipeline_modes):
    B, N = x.shape
    itemsize = jnp.dtype(x.dtype).itemsize
    num_tiles = pl.cdiv(B, tb)

    # Constant-index weight/bias: one buffer is enough (default 2 is waste).
    w_mode = pl.Buffered(1) if use_pipeline_modes else None
    # Small-N per-step compute is short; deepen the x pipeline to hide its DMA.
    x_mode = (pl.Buffered(3)
              if (use_pipeline_modes and N <= 256 and num_tiles >= 4) else None)
    nbuf_x = 3 if x_mode is not None else 2

    vmem_needed = ((N * N + N) * jnp.dtype(wt.dtype).itemsize
                   * (1 if use_pipeline_modes else 2)
                   + (nbuf_x + 2) * tb * N * itemsize)
    cap = _vmem_capacity_bytes()
    vmem_limit = int(min(0.85 * cap, max(vmem_needed + (8 << 20), 32 << 20)))

    flops = 2 * B * N * N + 4 * B * N
    bytes_accessed = (2 * B * N + N * N + N) * itemsize

    return pl.pallas_call(
        functools.partial(_resident_kernel, precision=precision),
        out_shape=jax.ShapeDtypeStruct((B, N), x.dtype),
        grid_spec=pltpu.PrefetchScalarGridSpec(
            num_scalar_prefetch=0,
            grid=(num_tiles,),
            in_specs=[
                _bspec((tb, N), lambda i: (i, 0), x_mode),   # x batch tile
                _bspec((N, N), lambda i: (0, 0), w_mode),    # W^T, resident
                _bspec((1, N), lambda i: (0, 0), w_mode),    # bias, resident
            ],
            out_specs=pl.BlockSpec((tb, N), lambda i: (i, 0)),
        ),
        compiler_params=pltpu.CompilerParams(
            dimension_semantics=("parallel",),
            vmem_limit_bytes=vmem_limit,
        ),
        cost_estimate=pl.CostEstimate(
            flops=int(flops), transcendentals=0,
            bytes_accessed=int(bytes_accessed)),
    )(x, wt, b2)


# ---------------------------------------------------------------------------
# Path B: large-N fallback, tiled over (batch, out-features, K reduction).
# ---------------------------------------------------------------------------
def _run_tiled(x, wt_p, b2_p, tile, tb, precision):
    B, N = x.shape
    Np = wt_p.shape[0]
    itemsize = jnp.dtype(x.dtype).itemsize
    # Zero-pad the feature (K) axis once so the reduction never reads
    # undefined out-of-bounds lanes (padded weight rows are zero -> exact).
    xp = x if Np == N else jnp.pad(x, ((0, 0), (0, Np - N)))

    tn = tk = tile
    grid = (pl.cdiv(B, tb), Np // tn, Np // tk)

    vmem_needed = ((2 * tb * tk + 2 * tb * tn + 2 * tk * tn + 2 * tn
                    + 2 * tb * tn) * itemsize + tb * tn * 4)
    cap = _vmem_capacity_bytes()
    vmem_limit = int(min(0.85 * cap, max(vmem_needed + (8 << 20), 32 << 20)))

    flops = 2 * B * Np * Np + 4 * B * Np
    bytes_accessed = (2 * B * Np + Np * Np + Np) * itemsize

    return pl.pallas_call(
        functools.partial(_tiled_kernel, precision=precision),
        out_shape=jax.ShapeDtypeStruct((B, N), x.dtype),
        grid_spec=pltpu.PrefetchScalarGridSpec(
            num_scalar_prefetch=0,
            grid=grid,
            in_specs=[
                pl.BlockSpec((tb, tk), lambda i, j, k: (i, k)),  # x, K tile
                pl.BlockSpec((tk, tn), lambda i, j, k: (k, j)),  # W^T tile
                pl.BlockSpec((1, tn), lambda i, j, k: (0, j)),   # bias tile
                pl.BlockSpec((tb, tn), lambda i, j, k: (i, j)),  # x, residual
            ],
            out_specs=pl.BlockSpec((tb, tn), lambda i, j, k: (i, j)),
            scratch_shapes=[pltpu.VMEM((tb, tn), jnp.float32)],
        ),
        compiler_params=pltpu.CompilerParams(
            dimension_semantics=("parallel", "parallel", "arbitrary"),
            vmem_limit_bytes=vmem_limit,
        ),
        cost_estimate=pl.CostEstimate(
            flops=int(flops), transcendentals=0,
            bytes_accessed=int(bytes_accessed)),
    )(xp, wt_p, b2_p, xp)


# ---------------------------------------------------------------------------
# Tile selection
# ---------------------------------------------------------------------------
def _normalize_user_tb(tb, B, sub):
    tb = int(tb)
    if tb <= 0:
        raise ValueError("tb must be positive")
    return tb if tb == B else _round_up(tb, sub)


def _pick_batch_tile_resident(B, N, itemsize, tb_user):
    sub = 8 if itemsize >= 4 else 16
    if tb_user is not None:
        return _normalize_user_tb(tb_user, B, sub)
    if B <= sub:
        return B                       # full-extent block, no padded rows
    cap = _vmem_capacity_bytes()
    budget = int(0.85 * cap) - (N * N + N) * itemsize - (8 << 20)
    per_row = 5 * N * itemsize         # up to 3 x buffers + 2 out buffers
    tb_max = max(sub, min((budget // max(per_row, 1)) // sub * sub, 2048))
    # Guarantee both TensorCores get a tile on 2-TC parts; balance tiles so the
    # last one carries < sub rows of padding for unlucky B.
    min_tiles = 2 if (_num_tensorcores_hint() >= 2 and B > sub) else 1
    ntiles = max(pl.cdiv(B, tb_max), min_tiles)
    return _round_up(pl.cdiv(B, ntiles), sub)


def _pick_batch_tile_tiled(B, itemsize, tb_user):
    sub = 8 if itemsize >= 4 else 16
    if tb_user is not None:
        return _normalize_user_tb(tb_user, B, sub)
    if B <= sub:
        return B
    min_tiles = 2 if (_num_tensorcores_hint() >= 2 and B > sub) else 1
    ntiles = max(pl.cdiv(B, 512), min_tiles)
    return _round_up(pl.cdiv(B, ntiles), sub)


# ---------------------------------------------------------------------------
# Public API
# ---------------------------------------------------------------------------
def prepare_params(w, b, *, force_tiled=False):
    """One-time parameter preparation (hoist out of the per-call path when the
    block is applied repeatedly).  Transposes the PyTorch-layout Linear weight
    (out_features, in_features) -> (in, out) so the kernel contraction is a
    plain ((1,),(0,)) MXU matmul with no per-tile re-layout of the resident
    weight; the large-N tiled path also zero-pads W / b to the MXU tile."""
    N = int(w.shape[0])
    assert w.shape == (N, N) and b.shape == (N,), (w.shape, b.shape)
    itemsize = jnp.dtype(w.dtype).itemsize
    cap = _vmem_capacity_bytes()
    # Weight-resident while a single-buffered copy stays within ~1/4 of VMEM
    # (~16 MiB on v7x, ~32 MiB on v5e/v6e); otherwise fall back to N/K tiling.
    use_tiled = force_tiled or (N * N * itemsize > cap // 4)
    wt = jnp.transpose(w)                            # (in_features, out_features)
    if not use_tiled:
        return {"mode": "resident", "n": N, "wt": wt, "b2": b.reshape(1, N)}
    tile = 128 if "v5" in _device_kind() else 256    # MXU-native width
    Np = _round_up(N, tile)
    if Np != N:
        wt = jnp.pad(wt, ((0, Np - N), (0, Np - N)))
        b = jnp.pad(b, (0, Np - N))
    return {"mode": "tiled", "n": N, "tile": tile, "wt": wt,
            "b2": b.reshape(1, Np)}


def residual_block_prepared(x, params, *, tb=None, precision=None):
    B, N = x.shape
    assert N == params["n"], (N, params["n"])
    itemsize = jnp.dtype(x.dtype).itemsize
    if params["mode"] == "resident":
        tb_eff = _pick_batch_tile_resident(B, N, itemsize, tb)
        try:
            return _run_resident(x, params["wt"], params["b2"], tb_eff,
                                 precision, use_pipeline_modes=True)
        except Exception:
            # Fallback if this Pallas build rejects pl.Buffered pipeline modes.
            return _run_resident(x, params["wt"], params["b2"], tb_eff,
                                 precision, use_pipeline_modes=False)
    tb_eff = _pick_batch_tile_tiled(B, itemsize, tb)
    return _run_tiled(x, params["wt"], params["b2"], params["tile"], tb_eff,
                      precision)


def residual_block(x, w, b, *, tb=None, precision=None, force_tiled=False):
    """LeakyReLU(LeakyReLU(x @ w.T + b) + x), with w/b in PyTorch nn.Linear
    layout.  For strict fp32 parity with PyTorch pass
    precision=jax.lax.Precision.HIGHEST (default uses the MXU-native path)."""
    params = prepare_params(w, b, force_tiled=force_tiled)
    return residual_block_prepared(x, params, tb=tb, precision=precision)


if __name__ == "__main__":
    key = jax.random.PRNGKey(0)
    kx, kw, kb, kx2, kw2, kb2 = jax.random.split(key, 6)

    def reference(x, w, b):
        y = x @ w.T + b
        y = jnp.where(y > 0, y, NEG_SLOPE * y)
        y = y + x
        return jnp.where(y > 0, y, NEG_SLOPE * y)

    def make_inputs(kx_, kw_, kb_, batch, n):
        bound = 1.0 / (n ** 0.5)
        w_ = jax.random.uniform(kw_, (n, n), jnp.float32, -bound, bound)
        b_ = jax.random.uniform(kb_, (n,), jnp.float32, -bound, bound)
        x_ = jax.random.normal(kx_, (batch, n), jnp.float32)
        # Round x / w to bf16-representable f32 so any MXU input-rounding mode
        # yields identical products; the comparison then only sees f32
        # summation-order noise.
        w_ = w_.astype(jnp.bfloat16).astype(jnp.float32)
        x_ = x_.astype(jnp.bfloat16).astype(jnp.float32)
        return x_, w_, b_

    # 1) Small shape -> weight-resident single-axis path.
    B, N = 16, 32
    x, w, b = make_inputs(kx, kw, kb, B, N)
    out = jax.block_until_ready(residual_block(x, w, b))
    ref = reference(x, w, b)
    assert out.shape == (B, N) and out.dtype == x.dtype
    err = float(jnp.max(jnp.abs(out - ref)))
    assert jnp.allclose(out, ref, atol=1e-4, rtol=1e-4), err

    # 2) Force the (batch, out-feature, K-reduction) tiled path; B / N chosen
    #    so the masked partial last batch and feature tiles are exercised.
    B2, N2 = 20, 384
    x2, w2, b2 = make_inputs(kx2, kw2, kb2, B2, N2)
    out2 = jax.block_until_ready(residual_block(x2, w2, b2, force_tiled=True))
    ref2 = reference(x2, w2, b2)
    assert out2.shape == (B2, N2) and out2.dtype == x2.dtype
    err2 = float(jnp.max(jnp.abs(out2 - ref2)))
    assert jnp.allclose(out2, ref2, atol=1e-4, rtol=1e-4), err2

    # TODO(synk): BatchNorm1d and Dropout exist in __init__ but are unused in
    # forward(), so they are intentionally not implemented.
    print("KERNEL_OK")
</pallas_src>

<mosaic_0001>
module attributes {stable_mosaic.version = 11 : i64} {
  func.func @_resident_kernel(%arg0: i32, %arg1: memref<16x32xf32, #tpu.memory_space<vmem>>, %arg2: memref<32x32xf32, #tpu.memory_space<vmem>>, %arg3: memref<1x32xf32, #tpu.memory_space<vmem>>, %arg4: memref<16x32xf32, #tpu.memory_space<vmem>>) attributes {dimension_semantics = [#tpu.dimension_semantics<parallel>], iteration_bounds = array<i64: 1>, scalar_prefetch = 0 : i64, scratch_operands = 0 : i64, tpu.core_type = #tpu.core_type<tc>, window_params = [{transform_indices = @transform_0, window_bounds = array<i64: 16, 32>}, {pipeline_mode = #tpu.pipeline_mode<synchronous>, transform_indices = @transform_1, window_bounds = array<i64: 32, 32>}, {pipeline_mode = #tpu.pipeline_mode<synchronous>, transform_indices = @transform_2, window_bounds = array<i64: 1, 32>}, {transform_indices = @transform_3, window_bounds = array<i64: 16, 32>}]} {
    %c0 = arith.constant 0 : index
    %c0_0 = arith.constant 0 : index
    %0 = vector.load %arg1[%c0, %c0_0] : memref<16x32xf32, #tpu.memory_space<vmem>>, vector<16x32xf32>
    %c0_1 = arith.constant 0 : index
    %c0_2 = arith.constant 0 : index
    %1 = vector.load %arg2[%c0_1, %c0_2] : memref<32x32xf32, #tpu.memory_space<vmem>>, vector<32x32xf32>
    %cst = arith.constant dense<0.000000e+00> : vector<16x32xf32>
    %2 = tpu.matmul %0, %1, %cst {dimension_numbers = #tpu.dot_dimension_numbers<[1], [0], [0], [1], [0, 0, 1, 1], [], []>} : vector<16x32xf32>, vector<32x32xf32>, vector<16x32xf32> -> vector<16x32xf32>
    %c0_3 = arith.constant 0 : index
    %c0_4 = arith.constant 0 : index
    %3 = vector.load %arg3[%c0_3, %c0_4] : memref<1x32xf32, #tpu.memory_space<vmem>>, vector<1x32xf32>
    %4 = vector.broadcast %3 : vector<1x32xf32> to vector<16x32xf32>
    %5 = arith.addf %2, %4 : vector<16x32xf32>
    %cst_5 = arith.constant 0.000000e+00 : f32
    %6 = vector.broadcast %cst_5 : f32 to vector<16x32xf32>
    %7 = arith.cmpf ogt, %5, %6 : vector<16x32xf32>
    %cst_6 = arith.constant 0.00999999977 : f32
    %8 = vector.broadcast %cst_6 : f32 to vector<16x32xf32>
    %9 = arith.mulf %8, %5 : vector<16x32xf32>
    %10 = arith.select %7, %5, %9 : vector<16x32xi1>, vector<16x32xf32>
    %11 = arith.addf %10, %0 : vector<16x32xf32>
    %cst_7 = arith.constant 0.000000e+00 : f32
    %12 = vector.broadcast %cst_7 : f32 to vector<16x32xf32>
    %13 = arith.cmpf ogt, %11, %12 : vector<16x32xf32>
    %cst_8 = arith.constant 0.00999999977 : f32
    %14 = vector.broadcast %cst_8 : f32 to vector<16x32xf32>
    %15 = arith.mulf %14, %11 : vector<16x32xf32>
    %16 = arith.select %13, %11, %15 : vector<16x32xi1>, vector<16x32xf32>
    %c0_9 = arith.constant 0 : index
    %c0_10 = arith.constant 0 : index
    %17 = vector.load %arg4[%c0_9, %c0_10] : memref<16x32xf32, #tpu.memory_space<vmem>>, vector<16x32xf32>
    tpu.vector_store %arg4[%c0_9, %c0_10], %16 {strides = array<i32>} : memref<16x32xf32, #tpu.memory_space<vmem>>, vector<16x32xf32>,
    return
  }
  func.func @transform_0(%arg0: i32) -> (i32, i32) {
    %c0_i32 = arith.constant 0 : i32
    %c0_i32_0 = arith.constant 0 : i32
    return %arg0, %c0_i32 : i32, i32
  }
  func.func @transform_1(%arg0: i32) -> (i32, i32) {
    %c0_i32 = arith.constant 0 : i32
    %c0_i32_0 = arith.constant 0 : i32
    %c0_i32_1 = arith.constant 0 : i32
    return %c0_i32, %c0_i32_0 : i32, i32
  }
  func.func @transform_2(%arg0: i32) -> (i32, i32) {
    %c0_i32 = arith.constant 0 : i32
    %c0_i32_0 = arith.constant 0 : i32
    %c0_i32_1 = arith.constant 0 : i32
    return %c0_i32, %c0_i32_0 : i32, i32
  }
  func.func @transform_3(%arg0: i32) -> (i32, i32) {
    %c0_i32 = arith.constant 0 : i32
    %c0_i32_0 = arith.constant 0 : i32
    return %arg0, %c0_i32 : i32, i32
  }
}

module attributes {stable_mosaic.version = 11 : i64} {
  func.func @_resident_kernel(%arg0: i32, %arg1: memref<16x32xf32, #tpu.memory_space<vmem>>, %arg2: memref<32x32xf32, #tpu.memory_space<vmem>>, %arg3: memref<1x32xf32, #tpu.memory_space<vmem>>, %arg4: memref<16x32xf32, #tpu.memory_space<vmem>>) attributes {dimension_semantics = [#tpu.dimension_semantics<parallel>], iteration_bounds = array<i64: 1>, scalar_prefetch = 0 : i64, scratch_operands = 0 : i64, tpu.core_type = #tpu.core_type<tc>, window_params = [{transform_indices = @transform_0, window_bounds = array<i64: 16, 32>}, {pipeline_mode = #tpu.pipeline_mode<synchronous>, transform_indices = @transform_1, window_bounds = array<i64: 32, 32>}, {pipeline_mode = #tpu.pipeline_mode<synchronous>, transform_indices = @transform_2, window_bounds = array<i64: 1, 32>}, {transform_indices = @transform_3, window_bounds = array<i64: 16, 32>}]} {
    %c0 = arith.constant 0 : index
    %c0_0 = arith.constant 0 : index
    %0 = vector.load %arg1[%c0, %c0_0] : memref<16x32xf32, #tpu.memory_space<vmem>>, vector<16x32xf32>
    %c0_1 = arith.constant 0 : index
    %c0_2 = arith.constant 0 : index
    %1 = vector.load %arg2[%c0_1, %c0_2] : memref<32x32xf32, #tpu.memory_space<vmem>>, vector<32x32xf32>
    %cst = arith.constant dense<0.000000e+00> : vector<16x32xf32>
    %2 = tpu.matmul %0, %1, %cst {dimension_numbers = #tpu.dot_dimension_numbers<[1], [0], [0], [1], [0, 0, 1, 1], [], []>} : vector<16x32xf32>, vector<32x32xf32>, vector<16x32xf32> -> vector<16x32xf32>
    %c0_3 = arith.constant 0 : index
    %c0_4 = arith.constant 0 : index
    %3 = vector.load %arg3[%c0_3, %c0_4] : memref<1x32xf32, #tpu.memory_space<vmem>>, vector<1x32xf32>
    %4 = vector.broadcast %3 : vector<1x32xf32> to vector<16x32xf32>
    %5 = arith.addf %2, %4 : vector<16x32xf32>
    %cst_5 = arith.constant 0.000000e+00 : f32
    %6 = vector.broadcast %cst_5 : f32 to vector<16x32xf32>
    %7 = arith.cmpf ogt, %5, %6 : vector<16x32xf32>
    %cst_6 = arith.constant 0.00999999977 : f32
    %8 = vector.broadcast %cst_6 : f32 to vector<16x32xf32>
    %9 = arith.mulf %8, %5 : vector<16x32xf32>
    %10 = arith.select %7, %5, %9 : vector<16x32xi1>, vector<16x32xf32>
    %11 = arith.addf %10, %0 : vector<16x32xf32>
    %cst_7 = arith.constant 0.000000e+00 : f32
    %12 = vector.broadcast %cst_7 : f32 to vector<16x32xf32>
    %13 = arith.cmpf ogt, %11, %12 : vector<16x32xf32>
    %cst_8 = arith.constant 0.00999999977 : f32
    %14 = vector.broadcast %cst_8 : f32 to vector<16x32xf32>
    %15 = arith.mulf %14, %11 : vector<16x32xf32>
    %16 = arith.select %13, %11, %15 : vector<16x32xi1>, vector<16x32xf32>
    %c0_9 = arith.constant 0 : index
    %c0_10 = arith.constant 0 : index
    %17 = vector.load %arg4[%c0_9, %c0_10] : memref<16x32xf32, #tpu.memory_space<vmem>>, vector<16x32xf32>
    tpu.vector_store %arg4[%c0_9, %c0_10], %16 {strides = array<i32>} : memref<16x32xf32, #tpu.memory_space<vmem>>, vector<16x32xf32>,
    return
  }
  func.func @transform_0(%arg0: i32) -> (i32, i32) {
    %c0_i32 = arith.constant 0 : i32
    %c0_i32_0 = arith.constant 0 : i32
    return %arg0, %c0_i32 : i32, i32
  }
  func.func @transform_1(%arg0: i32) -> (i32, i32) {
    %c0_i32 = arith.constant 0 : i32
    %c0_i32_0 = arith.constant 0 : i32
    %c0_i32_1 = arith.constant 0 : i32
    return %c0_i32, %c0_i32_0 : i32, i32
  }
  func.func @transform_2(%arg0: i32) -> (i32, i32) {
    %c0_i32 = arith.constant 0 : i32
    %c0_i32_0 = arith.constant 0 : i32
    %c0_i32_1 = arith.constant 0 : i32
    return %c0_i32, %c0_i32_0 : i32, i32
  }
  func.func @transform_3(%arg0: i32) -> (i32, i32) {
    %c0_i32 = arith.constant 0 : i32
    %c0_i32_0 = arith.constant 0 : i32
    return %arg0, %c0_i32 : i32, i32
  }
}

</mosaic_0001>

<bundles_post_ra>
// kernel: tpu_custom_call.1
= control target key start
LH: loop header
LB: loop body
LE: loop exit
PB: predicated region body
PF: predicated region fallthrough
CT: control target
= control target key end

     0   :  { %8 = vsyncpa [#allocation3], 0  ;;  %s263_s0 = inlined_call_operand.hbm [shape: f32[16,32], index: 0, kind: input, shape index: {}]   ;;  %s264_s1 = inlined_call_operand.hbm [shape: f32[32,32], index: 1, kind: input, shape index: {}]   ;;  %s265_s2 = inlined_call_operand.vmem [shape: f32[1,32], index: 2, kind: input, shape index: {}]   ;;  %s266_s3 = inlined_call_operand.hbm [shape: f32[16,32], index: 3, kind: output, shape index: {}]  }
   0x1   :  { %9 = vsyncpa [#allocation6], 0 }
   0x2   :  { %10 = vsyncpa [#allocation4], 0  ;;  %s15_s14 = sshll.u32 %s263_s0, 4  ;;  %s213_s15 = smov [#allocation2]   ;;  %s16_s14 = int_to_ptr.hbm [resolvable:$true] %s15_s14 }
   0x3   :  { %s17_s16 = sshll.u32 %s213_s15, 4  ;;  %s28_s19 = sshll.u32 %s264_s1, 4  ;;  %s18_s16 = int_to_ptr.vmem [resolvable:$true] %s17_s16  ;;  %s29_s19 = int_to_ptr.hbm [resolvable:$true] %s28_s19 }
   0x4   :  { %s214_s20 = smov 128   ;;  %s215_s21 = smov 8  }
   0x5   :  { %23 = dma.hbm_to_vmem [thread:$0]  %s16_s14, 256, %s18_s16, [#allocation3], %s214_s20, %s214_s20, %s215_s21  }
   0x6   :  { %s216_s22 = smov [#allocation5]  }
   0x7   :  { %s30_s23 = sshll.u32 %s216_s22, 4  ;;  %s31_s23 = int_to_ptr.vmem [resolvable:$true] %s30_s23 }
   0x8   :  { %36 = dma.hbm_to_vmem [thread:$0]  %s29_s19, 512, %s31_s23, [#allocation6], %s214_s20, %s214_s20, %s215_s21  }
   0x9   :  { %207 = dma.done.wait [#allocation3], 256  }
   0xa   :  { %208 = vsyncadd [#allocation3], 4294967040 }
   0xb   :  { %209 = dma.done.wait [#allocation6], 512  }
   0xc   :  { %210 = vsyncadd [#allocation6], 4294966784  ;;  %v52_v0 = vld [vmem:[#allocation5 + $0x18] sm:$0xff]  ;;  %v51_v1 = vld [vmem:[#allocation5 + $0x10] sm:$0xff]  ;;  %vm57_vm0 = vcmask 261120   ;;  %s217_s24 = smov [#allocation7]  }
   0xd   :  { %76 = vmatpush.msra.mxu0 %v52_v0  ;;  %125 = vmatpush.msra.mxu1 %v52_v0  ;;  %v50_v2 = vld [vmem:[#allocation5 + $0x8] sm:$0xff]  ;;  %v49_v3 = vld [vmem:[#allocation5] sm:$0xff]  ;;  %v47_v4 = vld [vmem:[#allocation2] sm:$0xff]  ;;  %s107_s25 = sshll.u32 %s217_s24, 4  ;;  %s109_s28 = sshll.u32 %s266_s3, 4  ;;  %s108_s25 = int_to_ptr.vmem [resolvable:$true] %s107_s25  ;;  %s110_s28 = int_to_ptr.hbm [resolvable:$true] %s109_s28 }
   0xe   :  { %v48_v5 = vld [vmem:[#allocation2 + $0x8] sm:$0xff]  ;;  %v134_v6 = vld [vmem:[%s265_s2] ss:$0 sm:$0xff] }
   0xf   :  { %77 = vmatpush.msra.mxu0 %v51_v1  ;;  %126 = vmatpush.msra.mxu1 %v51_v1 }
  0x11   :  { %78 = vmatpush.msra.mxu0 %v50_v2  ;;  %127 = vmatpush.msra.mxu1 %v50_v2 }
  0x13   :  { %79 = vmatpush.msra.mxu0 %v49_v3  ;;  %128 = vmatpush.msra.mxu1 %v49_v3 }
  0x14   :  { %123 = vmatmul.msk.f32.vlgmr.msra.gmra.mxu0 %vm57_vm0, %v47_v4  ;;  %124 = vmatmul.msk.f32.vlgmr.msra.gmra.mxu1 %vm57_vm0, %v48_v5 }
  0x91   :  { %v81_v7 = vpop.f32.mrf.mxu0  ;;  %v84_v8 = vpop.f32.mrf.mxu1 }
  0x92   :  { %v82_v9 = vadd.f32 %v134_v6, %v81_v7  ;;  %v85_v10 = vadd.f32 %v134_v6, %v84_v8 }
  0x94   :  { %vm87_vm1 = vcmp.gt.f32.partialorder %v82_v9, 0.0  ;;  %v89_v11 = vmul.f32 0.01, %v82_v9  ;;  %vm88_vm2 = vcmp.gt.f32.partialorder %v85_v10, 0.0  ;;  %v90_v12 = vmul.f32 0.01, %v85_v10 }
  0x96   :  { %v91_v13 = vsel %vm87_vm1, %v82_v9, %v89_v11  ;;  %v92_v14 = vsel %vm88_vm2, %v85_v10, %v90_v12 }
  0x97   :  { %v93_v15 = vadd.f32 %v91_v13, %v47_v4  ;;  %v94_v16 = vadd.f32 %v92_v14, %v48_v5 }
  0x99   :  { %v97_v17 = vmul.f32 0.01, %v93_v15  ;;  %v98_v18 = vmul.f32 0.01, %v94_v16  ;;  %vm95_vm3 = vcmp.gt.f32.partialorder %v93_v15, 0.0  ;;  %vm96_vm4 = vcmp.gt.f32.partialorder %v94_v16, 0.0 }
  0x9b   :  { %v99_v19 = vsel %vm95_vm3, %v93_v15, %v97_v17  ;;  %v100_v20 = vsel %vm96_vm4, %v94_v16, %v98_v18 }
  0x9c   :  { %101 = vst.msk [vmem:[#allocation7] sm:$0xff] %vm57_vm0, %v99_v19 }
  0x9d   :  { %102 = vst.msk [vmem:[#allocation7 + $0x8] sm:$0xff] %vm57_vm0, %v100_v20 }
  0x9e   :  { %115 = dma.vmem_to_hbm [thread:$0]  %s108_s25, 256, %s110_s28, [#allocation4], %s214_s20, %s214_s20, %s215_s21  }
  0x9f   :  { %211 = dma.done.wait [#allocation4], 256  }
  0xa0   :  { %212 = vsyncadd [#allocation4], 4294967040 }
  0xa1   :  { %120 = vsyncpa [#allocation3], 1 }
  0xa2   :  { %121 = vsyncpa [#allocation6], 1 }
  0xa3   :  { %122 = vsyncpa [#allocation4], 1 }

// kernel: tpu_custom_call.1
= control target key start
LH: loop header
LB: loop body
LE: loop exit
PB: predicated region body
PF: predicated region fallthrough
CT: control target
= control target key end

     0   :  { %8 = vsyncpa [#allocation3], 0  ;;  %s263_s0 = inlined_call_operand.hbm [shape: f32[16,32], index: 0, kind: input, shape index: {}]   ;;  %s264_s1 = inlined_call_operand.hbm [shape: f32[32,32], index: 1, kind: input, shape index: {}]   ;;  %s265_s2 = inlined_call_operand.vmem [shape: f32[1,32], index: 2, kind: input, shape index: {}]   ;;  %s266_s3 = inlined_call_operand.hbm [shape: f32[16,32], index: 3, kind: output, shape index: {}]  }
   0x1   :  { %9 = vsyncpa [#allocation6], 0 }
   0x2   :  { %10 = vsyncpa [#allocation4], 0  ;;  %s15_s14 = sshll.u32 %s263_s0, 4  ;;  %s213_s15 = smov [#allocation2]   ;;  %s16_s14 = int_to_ptr.hbm [resolvable:$true] %s15_s14 }
   0x3   :  { %s17_s16 = sshll.u32 %s213_s15, 4  ;;  %s28_s19 = sshll.u32 %s264_s1, 4  ;;  %s18_s16 = int_to_ptr.vmem [resolvable:$true] %s17_s16  ;;  %s29_s19 = int_to_ptr.hbm [resolvable:$true] %s28_s19 }
   0x4   :  { %s214_s20 = smov 128   ;;  %s215_s21 = smov 8  }
   0x5   :  { %23 = dma.hbm_to_vmem [thread:$0]  %s16_s14, 256, %s18_s16, [#allocation3], %s214_s20, %s214_s20, %s215_s21  }
   0x6   :  { %s216_s22 = smov [#allocation5]  }
   0x7   :  { %s30_s23 = sshll.u32 %s216_s22, 4  ;;  %s31_s23 = int_to_ptr.vmem [resolvable:$true] %s30_s23 }
   0x8   :  { %36 = dma.hbm_to_vmem [thread:$0]  %s29_s19, 512, %s31_s23, [#allocation6], %s214_s20, %s214_s20, %s215_s21  }
   0x9   :  { %207 = dma.done.wait [#allocation3], 256  }
   0xa   :  { %208 = vsyncadd [#allocation3], 4294967040 }
   0xb   :  { %209 = dma.done.wait [#allocation6], 512  }
   0xc   :  { %210 = vsyncadd [#allocation6], 4294966784  ;;  %v52_v0 = vld [vmem:[#allocation5 + $0x18] sm:$0xff]  ;;  %v51_v1 = vld [vmem:[#allocation5 + $0x10] sm:$0xff]  ;;  %vm57_vm0 = vcmask 261120   ;;  %s217_s24 = smov [#allocation7]  }
   0xd   :  { %76 = vmatpush.msra.mxu0 %v52_v0  ;;  %125 = vmatpush.msra.mxu1 %v52_v0  ;;  %v50_v2 = vld [vmem:[#allocation5 + $0x8] sm:$0xff]  ;;  %v49_v3 = vld [vmem:[#allocation5] sm:$0xff]  ;;  %v47_v4 = vld [vmem:[#allocation2] sm:$0xff]  ;;  %s107_s25 = sshll.u32 %s217_s24, 4  ;;  %s109_s28 = sshll.u32 %s266_s3, 4  ;;  %s108_s25 = int_to_ptr.vmem [resolvable:$true] %s107_s25  ;;  %s110_s28 = int_to_ptr.hbm [resolvable:$true] %s109_s28 }
   0xe   :  { %v48_v5 = vld [vmem:[#allocation2 + $0x8] sm:$0xff]  ;;  %v134_v6 = vld [vmem:[%s265_s2] ss:$0 sm:$0xff] }
   0xf   :  { %77 = vmatpush.msra.mxu0 %v51_v1  ;;  %126 = vmatpush.msra.mxu1 %v51_v1 }
  0x11   :  { %78 = vmatpush.msra.mxu0 %v50_v2  ;;  %127 = vmatpush.msra.mxu1 %v50_v2 }
  0x13   :  { %79 = vmatpush.msra.mxu0 %v49_v3  ;;  %128 = vmatpush.msra.mxu1 %v49_v3 }
  0x14   :  { %123 = vmatmul.msk.f32.vlgmr.msra.gmra.mxu0 %vm57_vm0, %v47_v4  ;;  %124 = vmatmul.msk.f32.vlgmr.msra.gmra.mxu1 %vm57_vm0, %v48_v5 }
  0x91   :  { %v81_v7 = vpop.f32.mrf.mxu0  ;;  %v84_v8 = vpop.f32.mrf.mxu1 }
  0x92   :  { %v82_v9 = vadd.f32 %v134_v6, %v81_v7  ;;  %v85_v10 = vadd.f32 %v134_v6, %v84_v8 }
  0x94   :  { %vm87_vm1 = vcmp.gt.f32.partialorder %v82_v9, 0.0  ;;  %v89_v11 = vmul.f32 0.01, %v82_v9  ;;  %vm88_vm2 = vcmp.gt.f32.partialorder %v85_v10, 0.0  ;;  %v90_v12 = vmul.f32 0.01, %v85_v10 }
  0x96   :  { %v91_v13 = vsel %vm87_vm1, %v82_v9, %v89_v11  ;;  %v92_v14 = vsel %vm88_vm2, %v85_v10, %v90_v12 }
  0x97   :  { %v93_v15 = vadd.f32 %v91_v13, %v47_v4  ;;  %v94_v16 = vadd.f32 %v92_v14, %v48_v5 }
  0x99   :  { %v97_v17 = vmul.f32 0.01, %v93_v15  ;;  %v98_v18 = vmul.f32 0.01, %v94_v16  ;;  %vm95_vm3 = vcmp.gt.f32.partialorder %v93_v15, 0.0  ;;  %vm96_vm4 = vcmp.gt.f32.partialorder %v94_v16, 0.0 }
  0x9b   :  { %v99_v19 = vsel %vm95_vm3, %v93_v15, %v97_v17  ;;  %v100_v20 = vsel %vm96_vm4, %v94_v16, %v98_v18 }
  0x9c   :  { %101 = vst.msk [vmem:[#allocation7] sm:$0xff] %vm57_vm0, %v99_v19 }
  0x9d   :  { %102 = vst.msk [vmem:[#allocation7 + $0x8] sm:$0xff] %vm57_vm0, %v100_v20 }
  0x9e   :  { %115 = dma.vmem_to_hbm [thread:$0]  %s108_s25, 256, %s110_s28, [#allocation4], %s214_s20, %s214_s20, %s215_s21  }
  0x9f   :  { %211 = dma.done.wait [#allocation4], 256  }
  0xa0   :  { %212 = vsyncadd [#allocation4], 4294967040 }
  0xa1   :  { %120 = vsyncpa [#allocation3], 1 }
  0xa2   :  { %121 = vsyncpa [#allocation6], 1 }
  0xa3   :  { %122 = vsyncpa [#allocation4], 1 }

</bundles_post_ra>
